<compile_context>
chip_gen: v7x
topology: tpu7x:2x2x1
jax: 0.10.0
libtpu: 0.0.40
codegen_flags: <defaults>
</compile_context>

<pallas_src>
import math

import jax
import jax.numpy as jnp
from jax import lax
from jax.experimental import pallas as pl
from jax.experimental.pallas import tpu as pltpu


# --------------------------------------------------------------------------
# Helpers
# --------------------------------------------------------------------------
def _vmem_limit_bytes():
    """~78% of physical per-core VMEM (128 MiB v5e/v6e, 64 MiB v7x)."""
    try:
        cap = pltpu.get_tpu_info().vmem_capacity_bytes
    except Exception:
        cap = 64 * 1024 * 1024  # conservative fallback (fits every generation)
    return int(cap * 0.78)


def _pick_tile(hw, candidates):
    """Largest preferred tile that divides HW; fall back to full HW."""
    for t in candidates:
        if t <= hw and hw % t == 0:
            return t
    # TODO(synk): non-128-multiple HW falls back to a single full-HW tile
    # (masked partial stores, no padding path); fine for small spatial sizes.
    return hw


# --------------------------------------------------------------------------
# Stage 1: Q / K / V projection (once per batch, bf16 outputs)
# --------------------------------------------------------------------------
def _qkv_proj_kernel(x_ref, r_ref, wq_ref, bq_ref, wk_ref, bk_ref,
                     wv_ref, bv_ref, q_out, k_out, v_out):
    # x_ref/r_ref: (C, tp) f32 tiles.  Weights bf16, biases f32 (rows, 1).
    xb = x_ref[...].astype(jnp.bfloat16)
    rb = r_ref[...].astype(jnp.bfloat16)
    q = lax.dot_general(wq_ref[...], xb, (((1,), (0,)), ((), ())),
                        preferred_element_type=jnp.float32) + bq_ref[...]
    k = lax.dot_general(wk_ref[...], rb, (((1,), (0,)), ((), ())),
                        preferred_element_type=jnp.float32) + bk_ref[...]
    v = lax.dot_general(wv_ref[...], xb, (((1,), (0,)), ((), ())),
                        preferred_element_type=jnp.float32) + bv_ref[...]
    q_out[...] = q.astype(q_out.dtype)
    k_out[...] = k.astype(k_out.dtype)
    v_out[...] = v.astype(v_out.dtype)   # row C == 1.0 (fused softmax denom)


# --------------------------------------------------------------------------
# Stage 2: attention kernels
# --------------------------------------------------------------------------
def _make_flash_kernel(c):
    """Online-softmax flash kernel; `c` = true channel count (static)."""
    def kernel(q_ref, k_ref, v_ref, x_ref, gamma_ref, out_ref, m_sc, acc_sc):
        ki = pl.program_id(2)

        @pl.when(ki == 0)
        def _init():
            m_sc[...] = jnp.full_like(m_sc, -jnp.inf)
            acc_sc[...] = jnp.zeros_like(acc_sc)

        # energy^T[j, i] = <k_j, q_i>  (scale already folded into q)
        e_t = lax.dot_general(k_ref[...], q_ref[...], (((0,), (0,)), ((), ())),
                              preferred_element_type=jnp.float32)   # (tk, tq)
        m_prev = m_sc[...]
        m_new = jnp.maximum(m_prev, jnp.max(e_t, axis=0, keepdims=True))
        alpha = jnp.exp(m_prev - m_new)                              # (1, tq)
        p = jnp.exp(e_t - m_new).astype(jnp.bfloat16)                # (tk, tq)
        # v_ref row `c` is all ones -> row c of acc carries sum(p, axis=0),
        # so no explicit sublane reduction is needed.
        acc_sc[...] = alpha * acc_sc[...] + lax.dot_general(
            v_ref[...], p, (((1,), (0,)), ((), ())),
            preferred_element_type=jnp.float32)                      # (Caug, tq)
        m_sc[...] = m_new

        @pl.when(ki == pl.num_programs(2) - 1)
        def _finish():
            acc = acc_sc[...]
            inv_l = pl.reciprocal(acc[c:c + 1, :], approx=True)      # EUP slot
            out_ref[...] = (gamma_ref[0, 0] * acc[:c, :] * inv_l
                            + x_ref[...]).astype(out_ref.dtype)
    return kernel


def _make_onepass_kernel(c):
    """Single-kv-tile fast path: one-shot softmax, no scratch / branches."""
    def kernel(q_ref, k_ref, v_ref, x_ref, gamma_ref, out_ref):
        e_t = lax.dot_general(k_ref[...], q_ref[...], (((0,), (0,)), ((), ())),
                              preferred_element_type=jnp.float32)    # (HW, tq)
        m = jnp.max(e_t, axis=0, keepdims=True)
        p = jnp.exp(e_t - m).astype(jnp.bfloat16)
        acc = lax.dot_general(v_ref[...], p, (((1,), (0,)), ((), ())),
                              preferred_element_type=jnp.float32)    # (Caug, tq)
        inv_l = pl.reciprocal(acc[c:c + 1, :], approx=True)
        out_ref[...] = (gamma_ref[0, 0] * acc[:c, :] * inv_l
                        + x_ref[...]).astype(out_ref.dtype)
    return kernel


# --------------------------------------------------------------------------
# Wrapper
# --------------------------------------------------------------------------
def self_attention_pallas(x_nchw, ref_nchw, wq, bq, wk, bk, wv, bv, gamma,
                          *, tq=256, tk=512):
    """PyTorch-style params: wq/wk (C//4, C), wv (C, C), bq/bk (C//4,),
    bv (C,), gamma scalar.  Inputs x/ref are NCHW float32."""
    B, C, H, W = x_nchw.shape
    HW = H * W
    C4 = wq.shape[0]

    # Channel-first flattened layout: HW is the lane-dense axis; free reshapes.
    x_flat = x_nchw.reshape(B, C, HW).astype(jnp.float32)
    r_flat = ref_nchw.reshape(B, C, HW).astype(jnp.float32)

    # 256-aligned tiles preferred (v6e/v7x MXU); clamped to divisors of HW.
    tq = _pick_tile(HW, (tq, 512, 256, 128))
    tk = _pick_tile(HW, (tk, 512, 256, 128))
    n_q, n_kv = HW // tq, HW // tk

    # Pad q/k projection width up to a sublane multiple; fold 1/sqrt(C//4)
    # into the query weights/bias; append a ones-row to the value projection
    # (row index C) so the softmax denominator comes out of the PV matmul.
    C4p = max(8, -(-C4 // 8) * 8)
    Caug = max(8, -(-(C + 1) // 8) * 8)
    scale = 1.0 / math.sqrt(C4)

    wq_p = jnp.zeros((C4p, C), jnp.float32).at[:C4].set(wq * scale).astype(jnp.bfloat16)
    wk_p = jnp.zeros((C4p, C), jnp.float32).at[:C4].set(wk).astype(jnp.bfloat16)
    wv_p = jnp.zeros((Caug, C), jnp.float32).at[:C].set(wv).astype(jnp.bfloat16)
    bq_p = jnp.zeros((C4p, 1), jnp.float32).at[:C4, 0].set(bq * scale)
    bk_p = jnp.zeros((C4p, 1), jnp.float32).at[:C4, 0].set(bk)
    bv_p = jnp.zeros((Caug, 1), jnp.float32).at[:C, 0].set(bv).at[C, 0].set(1.0)
    gamma_s = jnp.asarray(gamma, jnp.float32).reshape(1, 1)

    vmem_limit = _vmem_limit_bytes()

    # ---- Stage 1: project Q (scaled), K, V_aug once per batch (bf16). ----
    tp = _pick_tile(HW, (512, 256, 128))
    n_p = HW // tp

    def w_spec(shape):
        nd = len(shape)
        return pl.BlockSpec(shape, lambda b, pi: (0,) * nd)

    q_all, k_all, v_all = pl.pallas_call(
        _qkv_proj_kernel,
        out_shape=(jax.ShapeDtypeStruct((B, C4p, HW), jnp.bfloat16),
                   jax.ShapeDtypeStruct((B, C4p, HW), jnp.bfloat16),
                   jax.ShapeDtypeStruct((B, Caug, HW), jnp.bfloat16)),
        grid_spec=pltpu.PrefetchScalarGridSpec(
            num_scalar_prefetch=0,
            grid=(B, n_p),
            in_specs=[
                pl.BlockSpec((None, C, tp), lambda b, pi: (b, 0, pi)),   # x
                pl.BlockSpec((None, C, tp), lambda b, pi: (b, 0, pi)),   # ref
                w_spec(wq_p.shape), w_spec(bq_p.shape),
                w_spec(wk_p.shape), w_spec(bk_p.shape),
                w_spec(wv_p.shape), w_spec(bv_p.shape),
            ],
            out_specs=(
                pl.BlockSpec((None, C4p, tp), lambda b, pi: (b, 0, pi)),
                pl.BlockSpec((None, C4p, tp), lambda b, pi: (b, 0, pi)),
                pl.BlockSpec((None, Caug, tp), lambda b, pi: (b, 0, pi)),
            ),
        ),
        compiler_params=pltpu.CompilerParams(
            dimension_semantics=("parallel", "parallel"),
            vmem_limit_bytes=vmem_limit,
        ),
    )(x_flat, r_flat, wq_p, bq_p, wk_p, bk_p, wv_p, bv_p)

    # ---- Stage 2: attention. ----
    out_shape = jax.ShapeDtypeStruct((B, C, HW), jnp.float32)

    def kv_spec(shape, index_map):
        # 3-deep buffering on kv-varying inputs when the kv loop is long
        # enough for DMA latency to be exposed (never hit in the demo).
        if n_kv >= 4:
            try:
                return pl.BlockSpec(shape, index_map, pipeline_mode=pl.Buffered(3))
            except Exception:
                pass
        return pl.BlockSpec(shape, index_map)

    if n_kv == 1:
        out_flat = pl.pallas_call(
            _make_onepass_kernel(C),
            out_shape=out_shape,
            grid_spec=pltpu.PrefetchScalarGridSpec(
                num_scalar_prefetch=0,
                grid=(B, n_q),
                in_specs=[
                    pl.BlockSpec((None, C4p, tq), lambda b, qi: (b, 0, qi)),
                    pl.BlockSpec((None, C4p, HW), lambda b, qi: (b, 0, 0)),
                    pl.BlockSpec((None, Caug, HW), lambda b, qi: (b, 0, 0)),
                    pl.BlockSpec((None, C, tq), lambda b, qi: (b, 0, qi)),
                    pl.BlockSpec(memory_space=pltpu.MemorySpace.SMEM),
                ],
                out_specs=pl.BlockSpec((None, C, tq), lambda b, qi: (b, 0, qi)),
            ),
            compiler_params=pltpu.CompilerParams(
                dimension_semantics=("parallel", "parallel"),
                vmem_limit_bytes=vmem_limit,
            ),
        )(q_all, k_all, v_all, x_flat, gamma_s)
    else:
        out_flat = pl.pallas_call(
            _make_flash_kernel(C),
            out_shape=out_shape,
            grid_spec=pltpu.PrefetchScalarGridSpec(
                num_scalar_prefetch=0,
                grid=(B, n_q, n_kv),
                in_specs=[
                    pl.BlockSpec((None, C4p, tq), lambda b, qi, ki: (b, 0, qi)),
                    kv_spec((None, C4p, tk), lambda b, qi, ki: (b, 0, ki)),
                    kv_spec((None, Caug, tk), lambda b, qi, ki: (b, 0, ki)),
                    pl.BlockSpec((None, C, tq), lambda b, qi, ki: (b, 0, qi)),
                    pl.BlockSpec(memory_space=pltpu.MemorySpace.SMEM),
                ],
                out_specs=pl.BlockSpec((None, C, tq), lambda b, qi, ki: (b, 0, qi)),
                scratch_shapes=[
                    pltpu.VMEM((1, tq), jnp.float32),      # running max
                    pltpu.VMEM((Caug, tq), jnp.float32),   # accumulator (+ denom row)
                ],
            ),
            compiler_params=pltpu.CompilerParams(
                dimension_semantics=("parallel", "parallel", "arbitrary"),
                vmem_limit_bytes=vmem_limit,
            ),
        )(q_all, k_all, v_all, x_flat, gamma_s)

    return out_flat.reshape(B, C, H, W)


# --------------------------------------------------------------------------
# Pure-JAX reference (mirrors the PyTorch forward, NCHW)
# --------------------------------------------------------------------------
def self_attention_ref(x, ref, wq, bq, wk, bk, wv, bv, gamma):
    B, C, H, W = x.shape
    HW = H * W
    C4 = wq.shape[0]
    xf = x.reshape(B, C, HW)
    rf = ref.reshape(B, C, HW)
    q = jnp.einsum("oc,bcp->bop", wq, xf) + bq[None, :, None]   # (B, C4, HW)
    k = jnp.einsum("oc,bcp->bop", wk, rf) + bk[None, :, None]   # (B, C4, HW)
    v = jnp.einsum("oc,bcp->bop", wv, xf) + bv[None, :, None]   # (B, C,  HW)
    energy = jnp.einsum("bci,bcj->bij", q, k) / math.sqrt(C4)   # (B, HW, HW)
    attention = jax.nn.softmax(energy, axis=-1)
    out = jnp.einsum("bcj,bij->bci", v, attention)              # (B, C, HW)
    return gamma * out.reshape(B, C, H, W) + x


if __name__ == "__main__":
    def make_params(key, C):
        C4 = C // 4
        ks = jax.random.split(key, 6)
        s_in = 1.0 / math.sqrt(C)
        wq = jax.random.uniform(ks[0], (C4, C), minval=-s_in, maxval=s_in, dtype=jnp.float32)
        bq = jax.random.uniform(ks[1], (C4,), minval=-s_in, maxval=s_in, dtype=jnp.float32)
        wk = jax.random.uniform(ks[2], (C4, C), minval=-s_in, maxval=s_in, dtype=jnp.float32)
        bk = jax.random.uniform(ks[3], (C4,), minval=-s_in, maxval=s_in, dtype=jnp.float32)
        wv = jax.random.uniform(ks[4], (C, C), minval=-s_in, maxval=s_in, dtype=jnp.float32)
        bv = jax.random.uniform(ks[5], (C,), minval=-s_in, maxval=s_in, dtype=jnp.float32)
        return wq, bq, wk, bk, wv, bv

    key = jax.random.PRNGKey(0)
    # The module inits gamma = 0 (output == x); use 0.5 to exercise the path.
    gamma = jnp.float32(0.5)

    # Config 1: small demo shape -> single kv tile -> one-shot softmax path.
    # Config 2: slightly larger spatial -> exercises the flash (online
    #           softmax) path with n_kv > 1.
    for (B, C, H, W) in [(2, 8, 16, 16), (1, 8, 32, 32)]:
        kx, kr, kp, key = jax.random.split(key, 4)
        x = jax.random.normal(kx, (B, C, H, W), dtype=jnp.float32)
        ref = jax.random.normal(kr, (B, C, H, W), dtype=jnp.float32)
        wq, bq, wk, bk, wv, bv = make_params(kp, C)

        out = self_attention_pallas(x, ref, wq, bq, wk, bk, wv, bv, gamma)
        out = jax.block_until_ready(out)

        expected = self_attention_ref(x, ref, wq, bq, wk, bk, wv, bv, gamma)
        assert out.shape == (B, C, H, W)
        max_err = float(jnp.max(jnp.abs(out - expected)))
        # bf16 MXU operands + approx reciprocal -> relaxed tolerance vs f32 ref.
        assert jnp.allclose(out, expected, atol=3e-2, rtol=3e-2), \
            f"mismatch vs reference at {(B, C, H, W)} (max abs err {max_err})"

    print("KERNEL_OK")
</pallas_src>

<mosaic_0001>
module attributes {stable_mosaic.version = 11 : i64} {
  func.func @_qkv_proj_kernel(%arg0: i32, %arg1: i32, %arg2: memref<1x8x256xf32, #tpu.memory_space<vmem>>, %arg3: memref<1x8x256xf32, #tpu.memory_space<vmem>>, %arg4: memref<8x8xbf16, #tpu.memory_space<vmem>>, %arg5: memref<8x1xf32, #tpu.memory_space<vmem>>, %arg6: memref<8x8xbf16, #tpu.memory_space<vmem>>, %arg7: memref<8x1xf32, #tpu.memory_space<vmem>>, %arg8: memref<16x8xbf16, #tpu.memory_space<vmem>>, %arg9: memref<16x1xf32, #tpu.memory_space<vmem>>, %arg10: memref<1x8x256xbf16, #tpu.memory_space<vmem>>, %arg11: memref<1x8x256xbf16, #tpu.memory_space<vmem>>, %arg12: memref<1x16x256xbf16, #tpu.memory_space<vmem>>) attributes {dimension_semantics = [#tpu.dimension_semantics<parallel>, #tpu.dimension_semantics<parallel>], iteration_bounds = array<i64: 2, 1>, scalar_prefetch = 0 : i64, scratch_operands = 0 : i64, tpu.core_type = #tpu.core_type<tc>, window_params = [{transform_indices = @transform_0, window_bounds = array<i64: 1, 8, 256>}, {transform_indices = @transform_1, window_bounds = array<i64: 1, 8, 256>}, {pipeline_mode = #tpu.pipeline_mode<synchronous>, transform_indices = @transform_2, window_bounds = array<i64: 8, 8>}, {pipeline_mode = #tpu.pipeline_mode<synchronous>, transform_indices = @transform_3, window_bounds = array<i64: 8, 1>}, {pipeline_mode = #tpu.pipeline_mode<synchronous>, transform_indices = @transform_4, window_bounds = array<i64: 8, 8>}, {pipeline_mode = #tpu.pipeline_mode<synchronous>, transform_indices = @transform_5, window_bounds = array<i64: 8, 1>}, {pipeline_mode = #tpu.pipeline_mode<synchronous>, transform_indices = @transform_6, window_bounds = array<i64: 16, 8>}, {pipeline_mode = #tpu.pipeline_mode<synchronous>, transform_indices = @transform_7, window_bounds = array<i64: 16, 1>}, {transform_indices = @transform_8, window_bounds = array<i64: 1, 8, 256>}, {transform_indices = @transform_9, window_bounds = array<i64: 1, 8, 256>}, {transform_indices = @transform_10, window_bounds = array<i64: 1, 16, 256>}]} {
    %c0 = arith.constant 0 : index
    %c0_0 = arith.constant 0 : index
    %c0_1 = arith.constant 0 : index
    %0 = vector.load %arg2[%c0, %c0_0, %c0_1] : memref<1x8x256xf32, #tpu.memory_space<vmem>>, vector<1x8x256xf32>
    %1 = vector.shape_cast %0 : vector<1x8x256xf32> to vector<8x256xf32>
    %2 = arith.truncf %1 : vector<8x256xf32> to vector<8x256xbf16>
    %c0_2 = arith.constant 0 : index
    %c0_3 = arith.constant 0 : index
    %c0_4 = arith.constant 0 : index
    %3 = vector.load %arg3[%c0_2, %c0_3, %c0_4] : memref<1x8x256xf32, #tpu.memory_space<vmem>>, vector<1x8x256xf32>
    %4 = vector.shape_cast %3 : vector<1x8x256xf32> to vector<8x256xf32>
    %5 = arith.truncf %4 : vector<8x256xf32> to vector<8x256xbf16>
    %c0_5 = arith.constant 0 : index
    %c0_6 = arith.constant 0 : index
    %6 = vector.load %arg4[%c0_5, %c0_6] : memref<8x8xbf16, #tpu.memory_space<vmem>>, vector<8x8xbf16>
    %cst = arith.constant dense<0.000000e+00> : vector<8x256xf32>
    %7 = tpu.matmul %6, %2, %cst {dimension_numbers = #tpu.dot_dimension_numbers<[1], [0], [0], [1], [0, 0, 1, 1], [], []>} : vector<8x8xbf16>, vector<8x256xbf16>, vector<8x256xf32> -> vector<8x256xf32>
    %c0_7 = arith.constant 0 : index
    %c0_8 = arith.constant 0 : index
    %8 = vector.load %arg5[%c0_7, %c0_8] : memref<8x1xf32, #tpu.memory_space<vmem>>, vector<8x1xf32>
    %9 = vector.broadcast %8 : vector<8x1xf32> to vector<8x256xf32>
    %10 = arith.addf %7, %9 : vector<8x256xf32>
    %c0_9 = arith.constant 0 : index
    %c0_10 = arith.constant 0 : index
    %11 = vector.load %arg6[%c0_9, %c0_10] : memref<8x8xbf16, #tpu.memory_space<vmem>>, vector<8x8xbf16>
    %cst_11 = arith.constant dense<0.000000e+00> : vector<8x256xf32>
    %12 = tpu.matmul %11, %5, %cst_11 {dimension_numbers = #tpu.dot_dimension_numbers<[1], [0], [0], [1], [0, 0, 1, 1], [], []>} : vector<8x8xbf16>, vector<8x256xbf16>, vector<8x256xf32> -> vector<8x256xf32>
    %c0_12 = arith.constant 0 : index
    %c0_13 = arith.constant 0 : index
    %13 = vector.load %arg7[%c0_12, %c0_13] : memref<8x1xf32, #tpu.memory_space<vmem>>, vector<8x1xf32>
    %14 = vector.broadcast %13 : vector<8x1xf32> to vector<8x256xf32>
    %15 = arith.addf %12, %14 : vector<8x256xf32>
    %c0_14 = arith.constant 0 : index
    %c0_15 = arith.constant 0 : index
    %16 = vector.load %arg8[%c0_14, %c0_15] : memref<16x8xbf16, #tpu.memory_space<vmem>>, vector<16x8xbf16>
    %cst_16 = arith.constant dense<0.000000e+00> : vector<16x256xf32>
    %17 = tpu.matmul %16, %2, %cst_16 {dimension_numbers = #tpu.dot_dimension_numbers<[1], [0], [0], [1], [0, 0, 1, 1], [], []>} : vector<16x8xbf16>, vector<8x256xbf16>, vector<16x256xf32> -> vector<16x256xf32>
    %c0_17 = arith.constant 0 : index
    %c0_18 = arith.constant 0 : index
    %18 = vector.load %arg9[%c0_17, %c0_18] : memref<16x1xf32, #tpu.memory_space<vmem>>, vector<16x1xf32>
    %19 = vector.broadcast %18 : vector<16x1xf32> to vector<16x256xf32>
    %20 = arith.addf %17, %19 : vector<16x256xf32>
    %21 = arith.truncf %10 : vector<8x256xf32> to vector<8x256xbf16>
    %c0_19 = arith.constant 0 : index
    %c0_20 = arith.constant 0 : index
    %c0_21 = arith.constant 0 : index
    %22 = vector.load %arg10[%c0_19, %c0_20, %c0_21] : memref<1x8x256xbf16, #tpu.memory_space<vmem>>, vector<1x8x256xbf16>
    %23 = vector.shape_cast %22 : vector<1x8x256xbf16> to vector<8x256xbf16>
    %24 = vector.shape_cast %21 : vector<8x256xbf16> to vector<1x8x256xbf16>
    tpu.vector_store %arg10[%c0_19, %c0_20, %c0_21], %24 {strides = array<i32>} : memref<1x8x256xbf16, #tpu.memory_space<vmem>>, vector<1x8x256xbf16>,
    %25 = arith.truncf %15 : vector<8x256xf32> to vector<8x256xbf16>
    %c0_22 = arith.constant 0 : index
    %c0_23 = arith.constant 0 : index
    %c0_24 = arith.constant 0 : index
    %26 = vector.load %arg11[%c0_22, %c0_23, %c0_24] : memref<1x8x256xbf16, #tpu.memory_space<vmem>>, vector<1x8x256xbf16>
    %27 = vector.shape_cast %26 : vector<1x8x256xbf16> to vector<8x256xbf16>
    %28 = vector.shape_cast %25 : vector<8x256xbf16> to vector<1x8x256xbf16>
    tpu.vector_store %arg11[%c0_22, %c0_23, %c0_24], %28 {strides = array<i32>} : memref<1x8x256xbf16, #tpu.memory_space<vmem>>, vector<1x8x256xbf16>,
    %29 = arith.truncf %20 : vector<16x256xf32> to vector<16x256xbf16>
    %c0_25 = arith.constant 0 : index
    %c0_26 = arith.constant 0 : index
    %c0_27 = arith.constant 0 : index
    %30 = vector.load %arg12[%c0_25, %c0_26, %c0_27] : memref<1x16x256xbf16, #tpu.memory_space<vmem>>, vector<1x16x256xbf16>
    %31 = vector.shape_cast %30 : vector<1x16x256xbf16> to vector<16x256xbf16>
    %32 = vector.shape_cast %29 : vector<16x256xbf16> to vector<1x16x256xbf16>
    tpu.vector_store %arg12[%c0_25, %c0_26, %c0_27], %32 {strides = array<i32>} : memref<1x16x256xbf16, #tpu.memory_space<vmem>>, vector<1x16x256xbf16>,
    return
  }
  func.func @transform_0(%arg0: i32, %arg1: i32) -> (i32, i32, i32) {
    %c0_i32 = arith.constant 0 : i32
    %c0_i32_0 = arith.constant 0 : i32
    return %arg0, %c0_i32, %arg1 : i32, i32, i32
  }
  func.func @transform_1(%arg0: i32, %arg1: i32) -> (i32, i32, i32) {
    %c0_i32 = arith.constant 0 : i32
    %c0_i32_0 = arith.constant 0 : i32
    return %arg0, %c0_i32, %arg1 : i32, i32, i32
  }
  func.func @transform_2(%arg0: i32, %arg1: i32) -> (i32, i32) {
    %c0_i32 = arith.constant 0 : i32
    %c0_i32_0 = arith.constant 0 : i32
    %c0_i32_1 = arith.constant 0 : i32
    return %c0_i32, %c0_i32_0 : i32, i32
  }
  func.func @transform_3(%arg0: i32, %arg1: i32) -> (i32, i32) {
    %c0_i32 = arith.constant 0 : i32
    %c0_i32_0 = arith.constant 0 : i32
    %c0_i32_1 = arith.constant 0 : i32
    return %c0_i32, %c0_i32_0 : i32, i32
  }
  func.func @transform_4(%arg0: i32, %arg1: i32) -> (i32, i32) {
    %c0_i32 = arith.constant 0 : i32
    %c0_i32_0 = arith.constant 0 : i32
    %c0_i32_1 = arith.constant 0 : i32
    return %c0_i32, %c0_i32_0 : i32, i32
  }
  func.func @transform_5(%arg0: i32, %arg1: i32) -> (i32, i32) {
    %c0_i32 = arith.constant 0 : i32
    %c0_i32_0 = arith.constant 0 : i32
    %c0_i32_1 = arith.constant 0 : i32
    return %c0_i32, %c0_i32_0 : i32, i32
  }
  func.func @transform_6(%arg0: i32, %arg1: i32) -> (i32, i32) {
    %c0_i32 = arith.constant 0 : i32
    %c0_i32_0 = arith.constant 0 : i32
    %c0_i32_1 = arith.constant 0 : i32
    return %c0_i32, %c0_i32_0 : i32, i32
  }
  func.func @transform_7(%arg0: i32, %arg1: i32) -> (i32, i32) {
    %c0_i32 = arith.constant 0 : i32
    %c0_i32_0 = arith.constant 0 : i32
    %c0_i32_1 = arith.constant 0 : i32
    return %c0_i32, %c0_i32_0 : i32, i32
  }
  func.func @transform_8(%arg0: i32, %arg1: i32) -> (i32, i32, i32) {
    %c0_i32 = arith.constant 0 : i32
    %c0_i32_0 = arith.constant 0 : i32
    return %arg0, %c0_i32, %arg1 : i32, i32, i32
  }
  func.func @transform_9(%arg0: i32, %arg1: i32) -> (i32, i32, i32) {
    %c0_i32 = arith.constant 0 : i32
    %c0_i32_0 = arith.constant 0 : i32
    return %arg0, %c0_i32, %arg1 : i32, i32, i32
  }
  func.func @transform_10(%arg0: i32, %arg1: i32) -> (i32, i32, i32) {
    %c0_i32 = arith.constant 0 : i32
    %c0_i32_0 = arith.constant 0 : i32
    return %arg0, %c0_i32, %arg1 : i32, i32, i32
  }
}

</mosaic_0001>

<bundles_post_ra>
// kernel: tpu_custom_call.1
= control target key start
LH: loop header
LB: loop body
LE: loop exit
PB: predicated region body
PF: predicated region fallthrough
CT: control target
= control target key end

     0   :  { %s1554_s0 = inlined_call_operand.vmem [shape: f32[2,8,256], index: 0, kind: input, shape index: {}]   ;;  %s1555_s1 = inlined_call_operand.hbm [shape: f32[2,8,256], index: 1, kind: input, shape index: {}]   ;;  %s1556_s2 = inlined_call_operand.vmem [shape: bf16[8,8], index: 2, kind: input, shape index: {}]   ;;  %s1557_s3 = inlined_call_operand.vmem [shape: f32[8,1], index: 3, kind: input, shape index: {}]   ;;  %s1558_s4 = inlined_call_operand.vmem [shape: bf16[8,8], index: 4, kind: input, shape index: {}]   ;;  %s1559_s5 = inlined_call_operand.vmem [shape: f32[8,1], index: 5, kind: input, shape index: {}]   ;;  %s1560_s6 = inlined_call_operand.vmem [shape: bf16[16,8], index: 6, kind: input, shape index: {}]   ;;  %s1561_s7 = inlined_call_operand.vmem [shape: f32[16,1], index: 7, kind: input, shape index: {}]   ;;  %s1562_s8 = inlined_call_operand.hbm [shape: bf16[2,8,256], index: 8, kind: output, shape index: {0}]   ;;  %s1563_s9 = inlined_call_operand.hbm [shape: bf16[2,8,256], index: 9, kind: output, shape index: {1}]   ;;  %s1564_s10 = inlined_call_operand.hbm [shape: bf16[2,16,256], index: 10, kind: output, shape index: {2}]  }
   0x1   :  { %1570 = sst [smem:[#allocation15_spill]] %s1554_s0 }
   0x2   :  { %1571 = sst [smem:[#allocation16_spill]] %s1555_s1 }
   0x3   :  { %1572 = sst [smem:[#allocation17_spill]] %s1556_s2 }
   0x4   :  { %16 = vsyncpa [#allocation3], 0 }
   0x5   :  { %18 = vsyncpa [#allocation3 + $0x1], 0 }
   0x6   :  { %19 = vsyncpa [#allocation4], 0 }
   0x7   :  { %21 = vsyncpa [#allocation4 + $0x1], 0 }
   0x8   :  { %22 = vsyncpa [#allocation7], 0 }
   0x9   :  { %24 = vsyncpa [#allocation7 + $0x1], 0  ;;  %s1267_s13 = smov 0   ;;  %s1269_s14 = smov 0  }
   0xa   :  { %s1271_s15 = smov 0   ;;  %s1273_s16 = smov 0  }
   0xb   :  { %s1275_s17 = smov 0   ;;  %s1277_s18 = smov 0  }
   0xc LB: > { %1573 = sst [smem:[#allocation12_spill]] %s1199_s17  ;;  %s1298_s19 = sadd.s32 4294967295, %s1203_s18   ;;  %s1203_s18 = sphi %s1277_s18, %s30_s18   ;;  %s1199_s17 = sphi %s1275_s17, %s1594_s17   ;;  %s1195_s16 = sphi %s1273_s16, %s1593_s16   ;;  %s1191_s15 = sphi %s1271_s15, %s1597_s15   ;;  %s1187_s14 = sphi %s1269_s14, %s1596_s14   ;;  %s1183_s13 = sphi %s1267_s13, %s1595_s13  }
   0xd   : > { %s1566_s20 = sadd.s32 4294967294, %s1203_s18   ;;  %s42_s21 = sadd.s32 1, %s1199_s17 }
   0xe   : > { %s79_s22 = sadd.s32 1, %s1191_s15  ;;  %p44_p0 = scmp.ge.s32.totalorder %s42_s21, 2 }
   0xf   : > { %p86_p1 = scmp.ne.s32.totalorder %s1191_s15, %s1187_s14  ;;  %p87_p2 = scmp.eq.s32.totalorder %s1203_s18, 0 }
  0x10   : > { %p92_p3 = scmp.ne.s32.totalorder %s1187_s14, %s1183_s13  ;;  %s1599_s21 = smov (%p44_p0, %s42_s21), 0 }
  0x11   : > { %1574 = sst [smem:[#allocation13_spill]] %s1599_s21  ;;  %p1310_p4 = por %p87_p2, %p86_p1 }
  0x12   : > { %p93_p5 = scmp.eq.s32.totalorder %s1298_s19, 0  ;;  %s74_s24 = ssub.s32 %s1199_s17, %s1599_s21 }
  0x13   : > { %p244_p6 = scmp.eq.s32.totalorder %s1298_s19, 1  ;;  %p77_p7 = scmp.eq.s32.totalorder %s74_s24, 0 }
  0x14   : > { %p1318_p8 = por %p93_p5, %p92_p3  ;;  %p250_p10 = scmp.eq.s32.totalorder %s1566_s20, 1 }
  0x15   : > { %p1322_p9 = por %p244_p6, %p86_p1  ;;  %p975_p13 = scmp.lt.s32.totalorder %s1203_s18, 2 }
  0x16   : > { %s1329_s27 = scalar_select %p77_p7, %s1191_s15, %s79_s22  }
  0x17   : > { %s1577_s26 = scalar_select %p1322_p9, 1, 0 }
  0x18   : > { %1578 = sst [smem:[#allocation14_spill]] %s1329_s27  ;;  %p1331_p11 = por %p250_p10, %p92_p3 }
  0x19   : > { %s357_s29 = sand.u32 1, %s1191_s15   ;;  %s944_s11 = sshll.u32 %s1199_s17, 8 }
  0x1a   : > { %s1579_s28 = scalar_select %p1331_p11, 1, 0 }
  0x1b   : > { %s912_s30 = sshll.u32 %s357_s29, 4  ;;  %s1580_s1 = sld [smem:[#allocation16_spill]] }
  0x1c   : > { %s361_s20 = scalar_lea.vmem [#allocation2], %s912_s30  ;;  %p1348_p0 = pnand %p975_p13, %p1310_p4 }
  0x1d   : > { %s371_s22 = sshll.u32 %s361_s20, 4  ;;  %s358_s12 = scalar_lea.sflag [#allocation3], %s357_s29  ;;  %s1344_s22 = int_to_ptr.vmem [resolvable:$true] %s371_s22 }
  0x1e   : > { %p1033_p5 = pneg %p1348_p0 }
  0x21   : > { %s1342_s21 = scalar_lea.hbm %s1580_s1, %s944_s11  ;;  %s1036_s23 = scalar_lea.hbm %s1580_s1, 512 }
  0x22   : > { %s1031_s11 = scalar_lea.hbm %s1342_s21, 256  ;;  %p1037_p4 = scmp.lt.u32.totalorder %s1342_s21, %s1580_s1 }
  0x23   : > { %p1032_p3 = scmp.ne.s32.totalorder %s1342_s21, %s1031_s11  ;;  %p1038_p10 = scmp.lt.u32.totalorder %s1036_s23, %s1031_s11 }
  0x24   : > { %p1040_p12 = scmp.lt.u32.totalorder %s1031_s11, %s1342_s21 }
  0x25   : > { %p1034_p6 = pnand %p1033_p5, %p1032_p3  ;;  %p1039_p13 = por %p1038_p10, %p1037_p4 }
  0x27   : > { %p1035_p7 = pneg %p1034_p6  ;;  %p1041_p1 = por %p1040_p12, %p1039_p13 }
  0x29   : > { %p1042_p2 = pnand %p1041_p1, %p1035_p7 }
  0x2b   : > { %1045 = shalt.err (!%p1042_p2)
}
  0x2c   : > { %s1046_s29 = scalar_lea.vmem %s1344_s22, 256  ;;  %s1205_s20 = smov [#allocation2]  }
  0x2d   : > { %p1047_p3 = scmp.ne.s32.totalorder %s1344_s22, %s1046_s29  ;;  %s1051_s30 = sshll.u32 %s1205_s20, 4  ;;  %s1052_s30 = int_to_ptr.vmem [resolvable:$false] %s1051_s30 }
  0x2e   : > { %s1053_s17 = scalar_lea.vmem %s1052_s30, 512  ;;  %p1054_p9 = scmp.lt.s32.totalorder %s1344_s22, %s1052_s30 }
  0x2f   : > { %p1049_p6 = pnand %p1047_p3, %p1033_p5  ;;  %p1055_p4 = scmp.lt.s32.totalorder %s1053_s17, %s1046_s29 }
  0x31   : > { %p1050_p11 = pneg %p1049_p6  ;;  %p1056_p10 = por %p1055_p4, %p1054_p9 }
  0x33   : > { %p1057_p12 = pnand %p1056_p10, %p1050_p11 }
  0x35   : > { %1060 = shalt.err (!%p1057_p12)
}
  0x36   : > { %964 = dma.hbm_to_vmem [thread:$0]  (!%p1348_p0), %s1342_s21, 256, %s1344_s22, %s358_s12  }
  0x37   : > { %p1582_p1 = scmp.lt.s32.totalorder %s1203_s18, 3  ;;  %p1583_p2 = scmp.ge.s32.totalorder %s1203_s18, 1 }
  0x39   : > { %p377_p5 = pnand %p1583_p2, %p1582_p1 }
  0x3a   : > { %s1384_s11 = sand.u32 (!%p377_p5), 1, %s1187_s14  }
  0x3b   : > { %380 = sbr.rel (%p377_p5) target bundleno = 362 (0x16a), region = 52  ;;  %s1569_s23 = sshll.u32 (!%p377_p5), %s1384_s11, 4 }
  0x3c   : > { %s383_s24 = scalar_lea.sflag (!%p377_p5), [#allocation3], %s1384_s11  ;;  %s386_s27 = scalar_lea.vmem (!%p377_p5), [#allocation2], %s1569_s23 }
  0x42   : > { %1170 = dma.done.wait (%p1318_p8), %s383_s24, 256  }
  0x43   : > { %1172 = vsyncadd (%p1318_p8), %s383_s24, 4294967040  ;;  %p443_p9 = scmp.lt.s32.totalorder %s1195_s16, 1  ;;  %v1206_v0 = vmov 0   ;;  %s1584_s0 = sld [smem:[#allocation15_spill]]  ;;  %vm476_vm0 = vcmask 1043456   ;;  %v462_v5 = vld [vmem:[%s386_s27 + $0x8] sm:$0xff] }
  0x44   : > { %515 = vmatprep.mubr.bf16.mxu0 %v1206_v0  ;;  %572 = vmatprep.mubr.bf16.mxu1 %v1206_v0  ;;  %v461_v6 = vld [vmem:[%s386_s27] sm:$0xff]  ;;  %v464_v7 = vpack.c.bf16 %v462_v5, %v462_v5  ;;  %s1585_s2 = sld [smem:[#allocation17_spill]]  ;;  %vm472_vm1 = vcmask 64512   ;;  %v584_v16 = vld [vmem:[%s1561_s7 + $0x8] sm:$0xff]  ;;  %s950_s27 = sshll.u32 %s1195_s16, 7 }
  0x45   : > { %s444_s21 = scalar_select %p443_p9, %s1195_s16, 1  ;;  %1028 = vset.pattern.permute.xlu0 %v1206_v0  ;;  %1029 = vset.pattern.permute.xlu1 %v1206_v0  ;;  %v463_v8 = vpack.c.bf16 %v461_v6, %v461_v6  ;;  %v525_v10 = vld [vmem:[%s1559_s5] sm:$0xff] }
  0x46   : > { %v583_v11 = vld [vmem:[%s1561_s7] sm:$0xff]  ;;  %924 = vmatprep.subr.msk.bf16.mxu1 %vm476_vm0, %v464_v7  ;;  %528 = vperm.xlu0 %1028, %v525_v10   ;;  %s1436_s24 = scalar_lea.hbm %s1562_s8, %s950_s27  ;;  %p1586_p11 = scmp.ne.s32.totalorder %s1577_s26, 0 }
  0x47   : > { %s945_s22 = sshll.u32 %s444_s21, 4  ;;  %v535_v13 = vsel %vm476_vm0, %v463_v8, 0  ;;  %v524_v14 = vld [vmem:[%s1558_s4] sm:$0xf]  ;;  %587 = vperm.xlu1 %1029, %v583_v11   ;;  %s917_s21 = sshll.u32 %s1384_s11, 3 }
  0x48   : > { %541 = vmatpush1.bf16.msra.mxu1 %v535_v13  ;;  %v466_v15 = vld [vmem:[%s1557_s3] sm:$0xff]  ;;  %s427_s12 = scalar_lea.vmem [#allocation5], %s917_s21  ;;  %s1207_s30 = smov [#allocation5]  }
  0x49   : > { %s450_s20 = scalar_lea.vmem %s1584_s0, %s945_s22  ;;  %v1030_v17 = vld [vmem:[%s1560_s6] sm:$0xff]   ;;  %s705_s29 = sshll.u32 %s427_s12, 4  ;;  %s1438_s29 = int_to_ptr.vmem [resolvable:$true] %s705_s29 }
  0x4a   : > { %v458_v1 = vld [vmem:[%s450_s20 + $0x8] sm:$0xff]  ;;  %v457_v2 = vld [vmem:[%s450_s20] sm:$0xff]  ;;  %469 = vperm.xlu0 %1028, %v466_v15   ;;  %s434_s20 = scalar_lea.vmem [#allocation6], %s917_s21  ;;  %s1443_s22 = scalar_lea.hbm %s1563_s9, %s950_s27 }
  0x4b   : > { %v460_v3 = vpack.c.bf16 %v458_v1, %v458_v1  ;;  %v459_v4 = vpack.c.bf16 %v457_v2, %v457_v2  ;;  %v465_v12 = vld [vmem:[%s1585_s2] sm:$0xf]  ;;  %925 = vmatmul.mubr.msk.bf16.vlgmr.msra.gmra.mrb[0].mxu1 %vm472_vm1, %v524_v14  ;;  %592 = vperm.xlu1 %1029, %v584_v16   ;;  %s721_s25 = sshll.u32 %s434_s20, 4  ;;  %s679_s0 = scalar_lea.sflag [#allocation4], %s1384_s11  ;;  %s1445_s25 = int_to_ptr.vmem [resolvable:$true] %s721_s25 }
  0x4c   : > { %s1061_s1 = scalar_lea.vmem %s1438_s29, 128  ;;  %s1065_s17 = sshll.u32 %s1207_s30, 4  ;;  %s1066_s17 = int_to_ptr.vmem [resolvable:$false] %s1065_s17 }
  0x4d   : > { %922 = vmatprep.subr.msk.bf16.mxu0 %vm476_vm0, %v460_v3  ;;  %v478_v9 = vsel %vm476_vm0, %v459_v4, 0  ;;  %p1062_p8 = scmp.ne.s32.totalorder %s1438_s29, %s1061_s1  ;;  %s1067_s2 = scalar_lea.vmem %s1066_s17, 256 }
  0x4e   : > { %484 = vmatpush1.bf16.msra.mxu0 %v478_v9  ;;  %p1068_p13 = scmp.lt.s32.totalorder %s1438_s29, %s1066_s17  ;;  %p1069_p3 = scmp.lt.s32.totalorder %s1067_s2, %s1061_s1 }
  0x4f   : > { %927 = vmatprep.subr.msk.bf16.mxu0 %vm476_vm0, %v460_v3  ;;  %p1063_p0 = pnand %p1062_p8, %p1586_p11 }
  0x50   : > { %p1070_p6 = por %p1069_p3, %p1068_p13 }
  0x51   : > { %923 = vmatmul.mubr.msk.bf16.vlgmr.msra.gmra.mrb[0].mxu0 %vm472_vm1, %v465_v12  ;;  %p1064_p7 = pneg %p1063_p0 }
  0x52   : > { %604 = vmatpush1.bf16.msra.mxu0 %v478_v9  ;;  %635 = vmatprep.mubr.bf16.mxu0 %v1206_v0 }
  0x53   : > { %p1071_p4 = pnand %p1070_p6, %p1064_p7 }
  0x59   : > { %928 = vmatmul.mubr.msk.bf16.vlgmr.msra.gmra.mrb[4].mxu0 %vm472_vm1, %v1030_v17 }
  0xc5   : > { %v529_v18 = vpop.permute.xlu0 %528 }
  0xc6   : > { %v1431_v32 = vpop.permute.xlu1 %587 }
  0xc9   : > { %v470_v19 = vpop.permute.xlu0 %469 }
 0x11e   : > { %v574_v23 = vpop.f32.mrb[0].mxu1 }
 0x11f   : > { %v575_v26 = vadd.f32 %v574_v23, %v529_v18  ;;  %v576_v27 = vpop.f32.mrb[1].mxu1 }
 0x120   : > { %v577_v29 = vadd.f32 %v576_v27, %v529_v18  ;;  %v578_v30 = vpop.f32.mrb[2].mxu1 }
 0x121   : > { %v579_v33 = vpop.f32.mrb[3].mxu1 }
 0x122   : > { %v947_v34 = vpack.c.bf16 %v577_v29, %v575_v26 }
 0x124   : > { %v517_v20 = vpop.f32.mrb[0].mxu0  ;;  %663 = vst [vmem:[%s434_s20] sm:$0xff] %v947_v34 }
 0x125   : > { %v518_v21 = vadd.f32 %v517_v20, %v470_v19  ;;  %v519_v22 = vpop.f32.mrb[1].mxu0 }
 0x126   : > { %v520_v24 = vadd.f32 %v519_v22, %v470_v19  ;;  %v521_v25 = vpop.f32.mrb[2].mxu0 }
 0x127   : > { %v522_v28 = vpop.f32.mrb[3].mxu0 }
 0x128   : > { %v946_v31 = vpack.c.bf16 %v520_v24, %v518_v21 }
 0x12a   : > { %654 = vst [vmem:[%s427_s12] sm:$0xff] %v946_v31 }
 0x12b   : > { %1074 = shalt.err (!%p1071_p4)
}
 0x12c   : > { %s1075_s23 = scalar_lea.hbm %s1436_s24, 128  ;;  %s1079_s20 = scalar_lea.hbm %s1562_s8, 256 }
 0x12d   : > { %p1076_p10 = scmp.ne.s32.totalorder %s1436_s24, %s1075_s23  ;;  %p1080_p2 = scmp.lt.u32.totalorder %s1436_s24, %s1562_s8 }
 0x12e   : > { %p1081_p5 = scmp.lt.u32.totalorder %s1079_s20, %s1075_s23  ;;  %p1083_p8 = scmp.lt.u32.totalorder %s1075_s23, %s1436_s24 }
 0x12f   : > { %p1077_p12 = pnand %p1076_p10, %p1586_p11 }
 0x130   : > { %p1082_p9 = por %p1081_p5, %p1080_p2 }
 0x131   : > { %p1078_p1 = pneg %p1077_p12 }
 0x132   : > { %p1084_p0 = por %p1083_p8, %p1082_p9 }
 0x134   : > { %p1085_p7 = pnand %p1084_p0, %p1078_p1 }
 0x136   : > { %1088 = shalt.err (!%p1085_p7)
}
 0x137   : > { %955 = dma.vmem_to_hbm [thread:$0]  (%p1586_p11), %s1438_s29, 128, %s1436_s24, %s679_s0   ;;  %v637_v35 = vpop.f32.mrb[4].mxu0 }
 0x138   : > { %s1587_s1 = sand.u32 1, %s1298_s19   ;;  %s1089_s17 = scalar_lea.vmem %s1445_s25, 128 }
 0x139   : > { %s1471_s2 = scalar_lea.sflag [#allocation7], %s1587_s1  ;;  %p1090_p13 = scmp.ne.s32.totalorder %s1445_s25, %s1089_s17 }
 0x13a   : > { %s1208_s23 = smov [#allocation6]  }
 0x13b   : > { %p1091_p3 = pnand %p1090_p13, %p1586_p11  ;;  %s1093_s27 = sshll.u32 %s1208_s23, 4  ;;  %s1094_s27 = int_to_ptr.vmem [resolvable:$false] %s1093_s27 }
 0x13c   : > { %s1095_s12 = scalar_lea.vmem %s1094_s27, 256  ;;  %p1096_p4 = scmp.lt.s32.totalorder %s1445_s25, %s1094_s27 }
 0x13d   : > { %p1092_p6 = pneg %p1091_p3  ;;  %p1097_p10 = scmp.lt.s32.totalorder %s1095_s12, %s1089_s17 }
 0x13f   : > { %p1098_p12 = por %p1097_p10, %p1096_p4 }
 0x141   : > { %p1099_p1 = pnand %p1098_p12, %p1092_p6 }
 0x143   : > { %1102 = shalt.err (!%p1099_p1)
}
 0x144   : > { %s1103_s0 = scalar_lea.hbm %s1443_s22, 128  ;;  %s1107_s24 = scalar_lea.hbm %s1563_s9, 256 }
 0x145   : > { %p1104_p2 = scmp.ne.s32.totalorder %s1443_s22, %s1103_s0  ;;  %p1108_p8 = scmp.lt.u32.totalorder %s1443_s22, %s1563_s9 }
 0x146   : > { %p1109_p0 = scmp.lt.u32.totalorder %s1107_s24, %s1103_s0  ;;  %p1111_p13 = scmp.lt.u32.totalorder %s1103_s0, %s1443_s22 }
 0x147   : > { %p1105_p5 = pnand %p1104_p2, %p1586_p11 }
 0x148   : > { %p1110_p7 = por %p1109_p0, %p1108_p8 }
 0x149   : > { %p1106_p9 = pneg %p1105_p5 }
 0x14a   : > { %p1112_p3 = por %p1111_p13, %p1110_p7 }
 0x14c   : > { %p1113_p6 = pnand %p1112_p3, %p1106_p9 }
 0x14e   : > { %1116 = shalt.err (!%p1113_p6)
}
 0x14f   : > { %956 = dma.vmem_to_hbm [thread:$0]  (%p1586_p11), %s1445_s25, 128, %s1443_s22, %s1471_s2   ;;  %v638_v36 = vadd.f32 %v637_v35, %v1431_v32  ;;  %v639_v37 = vpop.f32.mrb[5].mxu0  ;;  %v593_v38 = vpop.permute.xlu1 %592 }
 0x150   : > { %v640_v39 = vadd.f32 %v639_v37, %v1431_v32  ;;  %s1588_s30 = sshll.u32 %s1384_s11, 4  ;;  %v641_v40 = vpop.f32.mrb[6].mxu0  ;;  %s952_s23 = sshll.u32 %s1195_s16, 8 }
 0x151   : > { %s441_s1 = scalar_lea.vmem [#allocation8], %s1588_s30  ;;  %v642_v41 = vadd.f32 %v641_v40, %v593_v38  ;;  %v643_v42 = vpop.f32.mrb[7].mxu0  ;;  %s1505_s25 = scalar_lea.hbm %s1564_s10, %s952_s23 }
 0x152   : > { %s736_s17 = sshll.u32 %s441_s1, 4  ;;  %v948_v43 = vpack.c.bf16 %v640_v39, %v638_v36  ;;  %v644_v44 = vadd.f32 %v643_v42, %v593_v38  ;;  %s1209_s16 = smov [#allocation8]   ;;  %s1500_s17 = int_to_ptr.vmem [resolvable:$true] %s736_s17 }
 0x153   : > { %s1117_s11 = scalar_lea.vmem %s1500_s17, 256  ;;  %s1121_s12 = sshll.u32 %s1209_s16, 4  ;;  %s1122_s12 = int_to_ptr.vmem [resolvable:$false] %s1121_s12 }
 0x154   : > { %676 = vst [vmem:[%s441_s1] sm:$0xff] %v948_v43  ;;  %v949_v45 = vpack.c.bf16 %v644_v44, %v642_v41  ;;  %p1118_p4 = scmp.ne.s32.totalorder %s1500_s17, %s1117_s11  ;;  %s1123_s0 = scalar_lea.vmem %s1122_s12, 512 }
 0x155   : > { %p1124_p1 = scmp.lt.s32.totalorder %s1500_s17, %s1122_s12  ;;  %p1125_p2 = scmp.lt.s32.totalorder %s1123_s0, %s1117_s11 }
 0x156   : > { %677 = vst [vmem:[%s441_s1 + $0x8] sm:$0xff] %v949_v45  ;;  %p1119_p10 = pnand %p1118_p4, %p1586_p11 }
 0x157   : > { %p1126_p5 = por %p1125_p2, %p1124_p1 }
 0x158   : > { %p1120_p12 = pneg %p1119_p10 }
 0x15a   : > { %p1127_p9 = pnand %p1126_p5, %p1120_p12 }
 0x15c   : > { %1130 = shalt.err (!%p1127_p9)
}
 0x15d   : > { %s1131_s19 = scalar_lea.hbm %s1505_s25, 256  ;;  %s1135_s20 = scalar_lea.hbm %s1564_s10, 512 }
 0x15e   : > { %p1132_p8 = scmp.ne.s32.totalorder %s1505_s25, %s1131_s19  ;;  %p1136_p13 = scmp.lt.u32.totalorder %s1505_s25, %s1564_s10 }
 0x15f   : > { %p1137_p3 = scmp.lt.u32.totalorder %s1135_s20, %s1131_s19  ;;  %p1139_p4 = scmp.lt.u32.totalorder %s1131_s19, %s1505_s25 }
 0x160   : > { %p1133_p0 = pnand %p1132_p8, %p1586_p11 }
 0x161   : > { %p1138_p6 = por %p1137_p3, %p1136_p13 }
 0x162   : > { %p1134_p7 = pneg %p1133_p0 }
 0x163   : > { %p1140_p10 = por %p1139_p4, %p1138_p6 }
 0x165   : > { %p1141_p12 = pnand %p1140_p10, %p1134_p7 }
 0x167   : > { %1144 = shalt.err (!%p1141_p12)
}
 0x168   : > { %s1210_s1 = smov 128   ;;  %s1211_s23 = smov 8  }
 0x169   : > { %957 = dma.vmem_to_hbm [thread:$0]  (%p1586_p11), %s1500_s17, 256, %s1505_s25, %s1471_s2, %s1210_s1, %s1210_s1, %s1211_s23  }
 0x16a PF: > { %s751_s27 = sand.u32 1, %s1183_s13   ;;  %p1589_p1 = scmp.ne.s32.totalorder %s1579_s28, 0 }
 0x16b   : > { %p1590_p2 = scmp.ge.s32.totalorder %s1203_s18, 2  ;;  %s752_s22 = scalar_lea.sflag [#allocation4], %s751_s27 }
 0x16d   : > { %p966_p5 = pnand %p1590_p2, %p1589_p1 }
 0x16f   : > { %1174 = dma.done.wait (!%p966_p5), %s752_s22, 128  }
 0x170   : > { %1176 = vsyncadd (!%p966_p5), %s752_s22, 4294967168  ;;  %s1591_s11 = sadd.s32 4294967294, %s1203_s18  }
 0x171   : > { %s760_s16 = sand.u32 1, %s1591_s11  }
 0x172   : > { %s761_s12 = scalar_lea.sflag [#allocation7], %s760_s16 }
 0x173   : > { %1178 = dma.done.wait (!%p966_p5), %s761_s12, 384  }
 0x174   : > { %1180 = vsyncadd (!%p966_p5), %s761_s12, 4294966912  ;;  %s30_s18 = sadd.s32 1, %s1203_s18   ;;  %s1592_s26 = sld [smem:[#allocation14_spill]] }
 0x175   : > { %p27_p11 = scmp.ge.s32.totalorder %s30_s18, 4   ;;  %s1593_s16 = sld [smem:[#allocation12_spill]] }
 0x176   : > { %s1594_s17 = sld [smem:[#allocation13_spill]]  ;;  %s1595_s13 = smov %s1187_s14 }
 0x177   : > { %s1596_s14 = smov %s1191_s15  ;;  %29 = sbr.rel (!%p27_p11) target bundleno = 12 (0xc), region = 132 }
 0x17a   : > { %s1597_s15 = smov %s1592_s26 }
 0x17e   :  { %775 = vsyncpa [#allocation3], 1 }
 0x17f   :  { %777 = vsyncpa [#allocation3 + $0x1], 1 }
 0x180   :  { %778 = vsyncpa [#allocation4], 1 }
 0x181   :  { %780 = vsyncpa [#allocation4 + $0x1], 1 }
 0x182   :  { %781 = vsyncpa [#allocation7], 1 }
 0x183   :  { %783 = vsyncpa [#allocation7 + $0x1], 1 }

</bundles_post_ra>
